<compile_context>
chip_gen: v7x
topology: tpu7x:2x2x1
jax: 0.10.0
libtpu: 0.0.40
codegen_flags: <defaults>
</compile_context>

<pallas_src>
import math
from typing import NamedTuple

import jax
import jax.numpy as jnp
from jax import lax
from jax.experimental import pallas as pl
from jax.experimental.pallas import tpu as pltpu

_LANE = 128
_SUBLANE = 8
_TM_MAX = 512        # row-tile cap (sweepable)
_NORM_EPS = 1e-12    # TODO(synk): tiny eps for NaN-safety on all-zero padded rows; torch ref has none.


def _round_up(x, m):
    return (x + m - 1) // m * m


def _gelu_exact(x):
    # torch.nn.functional.gelu default (erf-based, exact)
    return 0.5 * x * (1.0 + lax.erf(x * (1.0 / math.sqrt(2.0))))


def _pattention_norm(a, n_slots):
    # Tokenformer "gelu_l2_norm": gelu, L2-normalize along slot axis, rescale by sqrt(real slots).
    g = _gelu_exact(a)
    inv = lax.rsqrt(jnp.sum(g * g, axis=-1, keepdims=True) + _NORM_EPS)
    return g * inv * jnp.float32(math.sqrt(n_slots))


# ----------------------------- Pallas kernel ---------------------------------------

def _make_kernel(n_slots, hp):
    f32 = jnp.float32
    bf16 = jnp.bfloat16

    def kernel(x_ref, h_ref,
               k1_ref, v1_ref,
               wi_ref, wh_ref,
               bi_ref, bh_ref,
               k2_ref, v2_ref,
               q_ref, hout_ref):
        x = x_ref[...]                     # (TM, Ep) bf16
        h_prev = h_ref[...]                # (TM, Hp) f32

        # ---- fc1 = Pattention(E -> H), then ReLU; keys pre-transposed to (Ep, Sp) ----
        s1 = jnp.dot(x, k1_ref[...], preferred_element_type=f32)
        a1 = _pattention_norm(s1, n_slots)
        xr = jnp.maximum(
            jnp.dot(a1.astype(bf16), v1_ref[...], preferred_element_type=f32), 0.0)

        # ---- GRUCell (torch gate order [r, z, n]); two fused (TM, 3Hp) matmuls ----
        gi = jnp.dot(xr.astype(bf16), wi_ref[...], preferred_element_type=f32) + bi_ref[...]
        gh = jnp.dot(h_prev.astype(bf16), wh_ref[...], preferred_element_type=f32) + bh_ref[...]
        r = jax.nn.sigmoid(gi[:, :hp] + gh[:, :hp])
        z = jax.nn.sigmoid(gi[:, hp:2 * hp] + gh[:, hp:2 * hp])
        n = jnp.tanh(gi[:, 2 * hp:] + r * gh[:, 2 * hp:])
        h_new = (1.0 - z) * n + z * h_prev              # f32 blend (keeps recurrence in f32)

        # ---- fc2 = Pattention(H -> n_actions); keys pre-transposed to (Hp, Sp) ----
        s2 = jnp.dot(h_new.astype(bf16), k2_ref[...], preferred_element_type=f32)
        a2 = _pattention_norm(s2, n_slots)
        q = jnp.dot(a2.astype(bf16), v2_ref[...], preferred_element_type=f32)

        q_ref[...] = q.astype(q_ref.dtype)
        hout_ref[...] = h_new.astype(hout_ref.dtype)

    return kernel


# ----------------------------- wrapper ---------------------------------------------

class Dims(NamedTuple):
    E: int
    H: int
    S: int
    A: int
    Ep: int
    Hp: int
    Sp: int
    Ap: int


def prepare_params(raw, weight_dtype=jnp.bfloat16):
    """Pad / transpose / fuse the torch-layout params once, wrapper-side (weights in bf16)."""
    k1, v1 = raw["k1"], raw["v1"]            # (S,E), (S,H)
    k2, v2 = raw["k2"], raw["v2"]            # (S,H), (S,A)
    w_ih, w_hh = raw["w_ih"], raw["w_hh"]    # (3H,H), (3H,H)
    b_ih = raw["b_ih"].reshape(-1)           # (3H,)
    b_hh = raw["b_hh"].reshape(-1)           # (3H,)

    S, E = k1.shape
    H = v1.shape[1]
    A = v2.shape[1]
    assert w_ih.shape == (3 * H, H), "GRU input dim must equal rnn_hidden_dim (fc1 output)"
    Ep, Hp, Sp, Ap = (_round_up(d, _LANE) for d in (E, H, S, A))

    def pad2(x, rows, cols, dtype):
        return jnp.pad(x, ((0, rows - x.shape[0]), (0, cols - x.shape[1]))).astype(dtype)

    def gate_t(w, g):  # (3H,H) gate g block, transposed + padded -> (Hp, Hp)
        return pad2(w[g * H:(g + 1) * H, :].T, Hp, Hp, weight_dtype)

    def pad_bias(v):   # (H,) -> (1, Hp) f32
        return jnp.pad(v, (0, Hp - H)).reshape(1, Hp).astype(jnp.float32)

    prep = {
        "k1_t": pad2(k1.T, Ep, Sp, weight_dtype),        # (Ep, Sp)
        "v1":   pad2(v1, Sp, Hp, weight_dtype),          # (Sp, Hp)
        # fused GRU weights: columns = [r | z | n] gate blocks, each (Hp, Hp)
        "w_i": jnp.concatenate([gate_t(w_ih, 0), gate_t(w_ih, 1), gate_t(w_ih, 2)], axis=1),
        "w_h": jnp.concatenate([gate_t(w_hh, 0), gate_t(w_hh, 1), gate_t(w_hh, 2)], axis=1),
        # fused biases: (1, 3Hp), f32 (added after f32 accumulation)
        "b_i": jnp.concatenate([pad_bias(b_ih[0:H]), pad_bias(b_ih[H:2 * H]),
                                pad_bias(b_ih[2 * H:3 * H])], axis=1),
        "b_h": jnp.concatenate([pad_bias(b_hh[0:H]), pad_bias(b_hh[H:2 * H]),
                                pad_bias(b_hh[2 * H:3 * H])], axis=1),
        "k2_t": pad2(k2.T, Hp, Sp, weight_dtype),        # (Hp, Sp)
        "v2":   pad2(v2, Sp, Ap, weight_dtype),          # (Sp, Ap)
    }
    return prep, Dims(E, H, S, A, Ep, Hp, Sp, Ap)


def _row_tiling(n_rows):
    """Pick (TM, Np): big tiles for single-TC chips, >=2 steps for v7x megacore, minimal padding."""
    n8 = _round_up(max(n_rows, _SUBLANE), _SUBLANE)
    if n8 <= 256:
        n_steps = 1
    else:
        n_steps = max(-(-n8 // _TM_MAX), 2)   # >=2 grid steps so both v7x TensorCores get work
    tm = _round_up(-(-n8 // n_steps), _SUBLANE)
    return tm, tm * n_steps


def pad_x(inputs, dims, np_rows):
    """(b, a, E) f32 -> (Np, Ep) bf16 (zero-padded)."""
    b, a, e = inputs.shape
    n = b * a
    x2d = inputs.reshape(n, e).astype(jnp.bfloat16)
    # TODO(synk): x could be passed at its true lane width E and padded inside VMEM to skip
    # this HBM write amplification; kept wrapper-side for lowering simplicity.
    return jnp.pad(x2d, ((0, np_rows - n), (0, dims.Ep - e)))


def pad_h(hidden_state, dims, np_rows):
    """hidden (..., H) or None -> (Np, Hp) f32 (zero-padded)."""
    if hidden_state is None:
        return jnp.zeros((np_rows, dims.Hp), jnp.float32)
    h2d = hidden_state.reshape(-1, dims.H).astype(jnp.float32)
    return jnp.pad(h2d, ((0, np_rows - h2d.shape[0]), (0, dims.Hp - dims.H)))


def pattention_rnn_core(x_pad, h_pad, prep, dims, tm):
    """Padded-layout forward: x_pad (Np, Ep) bf16, h_pad (Np, Hp) f32 -> (q_pad, h_new_pad).

    Callers rolling the RNN over many steps should keep h in this padded f32 layout
    (the hidden HBM buffer is updated in place via input_output_aliases)."""
    np_rows, ep = x_pad.shape
    assert ep == dims.Ep and np_rows % tm == 0 and h_pad.shape == (np_rows, dims.Hp)
    grid = (np_rows // tm,)

    row = lambda feat: pl.BlockSpec((tm, feat), lambda i: (i, 0))   # per-tile rows
    res = lambda arr: pl.BlockSpec(arr.shape, lambda i: (0, 0))     # VMEM-resident weights
    # TODO(synk): constant-index weights could use pipeline_mode=pl.Buffered(1) to halve their
    # VMEM; negligible at slot_num=16 so left at the default double-buffering here.

    q_pad, h_new = pl.pallas_call(
        _make_kernel(dims.S, dims.Hp),
        out_shape=(jax.ShapeDtypeStruct((np_rows, dims.Ap), jnp.float32),
                   jax.ShapeDtypeStruct((np_rows, dims.Hp), jnp.float32)),
        grid=grid,
        in_specs=[
            row(dims.Ep), row(dims.Hp),
            res(prep["k1_t"]), res(prep["v1"]),
            res(prep["w_i"]), res(prep["w_h"]),
            res(prep["b_i"]), res(prep["b_h"]),
            res(prep["k2_t"]), res(prep["v2"]),
        ],
        out_specs=(row(dims.Ap), row(dims.Hp)),
        input_output_aliases={1: 1},    # hidden-state HBM buffer reused for h_new
        compiler_params=pltpu.CompilerParams(
            dimension_semantics=("parallel",),
            vmem_limit_bytes=32 * 1024 * 1024,
        ),
    )(x_pad, h_pad,
      prep["k1_t"], prep["v1"],
      prep["w_i"], prep["w_h"],
      prep["b_i"], prep["b_h"],
      prep["k2_t"], prep["v2"])
    return q_pad, h_new


def pattention_rnn_agent_forward(inputs, hidden_state, prep, dims):
    """inputs: (b, a, E) f32; hidden_state: (b, a, H) or None. Returns (q (b,a,A), h (b,a,H))."""
    b, a, e = inputs.shape
    assert e == dims.E
    n = b * a
    tm, np_rows = _row_tiling(n)
    q_pad, h_pad = pattention_rnn_core(
        pad_x(inputs, dims, np_rows), pad_h(hidden_state, dims, np_rows), prep, dims, tm)
    q = q_pad[:n, :dims.A].reshape(b, a, dims.A)
    h = h_pad[:n, :dims.H].reshape(b, a, dims.H)
    return q, h


# ----------------------------- pure-JAX reference (correctness check) --------------

def _reference_forward(inputs, hidden_state, raw, matmul_dtype=jnp.float32):
    md = matmul_dtype
    mm = lambda x, w: jnp.dot(x.astype(md), w.astype(md), preferred_element_type=jnp.float32)
    b, a, e = inputs.shape
    S = raw["k1"].shape[0]
    H = raw["w_hh"].shape[1]
    x = inputs.reshape(-1, e).astype(jnp.float32)
    h_prev = (jnp.zeros((b * a, H), jnp.float32) if hidden_state is None
              else hidden_state.reshape(-1, H).astype(jnp.float32))

    a1 = _pattention_norm(mm(x, raw["k1"].T), S)
    xr = jnp.maximum(mm(a1, raw["v1"]), 0.0)

    gi = mm(xr, raw["w_ih"].T) + raw["b_ih"]
    gh = mm(h_prev, raw["w_hh"].T) + raw["b_hh"]
    r = jax.nn.sigmoid(gi[:, :H] + gh[:, :H])
    z = jax.nn.sigmoid(gi[:, H:2 * H] + gh[:, H:2 * H])
    n = jnp.tanh(gi[:, 2 * H:] + r * gh[:, 2 * H:])
    h_new = (1.0 - z) * n + z * h_prev

    a2 = _pattention_norm(mm(h_new, raw["k2"].T), S)
    q = mm(a2, raw["v2"])
    return q.reshape(b, a, -1), h_new.reshape(b, a, -1)


# ----------------------------- parameter init (deterministic, synthetic) -----------

def init_params(key, input_dim, hidden_dim, n_actions, slot_num):
    ks = jax.random.split(key, 8)
    bound = 1.0 / math.sqrt(hidden_dim)   # PyTorch GRUCell default init range
    return {
        "k1": jax.random.normal(ks[0], (slot_num, input_dim), jnp.float32) / math.sqrt(input_dim),
        "v1": jax.random.normal(ks[1], (slot_num, hidden_dim), jnp.float32) / math.sqrt(slot_num),
        "w_ih": jax.random.uniform(ks[2], (3 * hidden_dim, hidden_dim), jnp.float32, -bound, bound),
        "w_hh": jax.random.uniform(ks[3], (3 * hidden_dim, hidden_dim), jnp.float32, -bound, bound),
        "b_ih": jax.random.uniform(ks[4], (3 * hidden_dim,), jnp.float32, -bound, bound),
        "b_hh": jax.random.uniform(ks[5], (3 * hidden_dim,), jnp.float32, -bound, bound),
        "k2": jax.random.normal(ks[6], (slot_num, hidden_dim), jnp.float32) / math.sqrt(hidden_dim),
        "v2": jax.random.normal(ks[7], (slot_num, n_actions), jnp.float32) / math.sqrt(slot_num),
    }


if __name__ == "__main__":
    batch, n_agents, input_dim = 2, 4, 16
    rnn_hidden_dim, n_actions, qkv_slot_num = 32, 8, 16

    key = jax.random.PRNGKey(0)
    k_in, k_h, k_p, k_seq = jax.random.split(key, 4)
    inputs = jax.random.normal(k_in, (batch, n_agents, input_dim), jnp.float32)
    hidden = 0.1 * jax.random.normal(k_h, (batch, n_agents, rnn_hidden_dim), jnp.float32)
    raw = init_params(k_p, input_dim, rnn_hidden_dim, n_actions, qkv_slot_num)
    prep, dims = prepare_params(raw)

    def check(got, ref_bf16, ref_f32, name):
        # tight vs. bf16-operand reference (same rounding of matmul inputs), loose vs. exact f32
        assert jnp.allclose(got, ref_bf16, atol=5e-3, rtol=5e-3), f"{name}: mismatch vs bf16 reference"
        assert jnp.allclose(got, ref_f32, atol=1e-1, rtol=1e-1), f"{name}: mismatch vs f32 reference"

    # --- single step with a provided hidden state ---
    q, h = pattention_rnn_agent_forward(inputs, hidden, prep, dims)
    q, h = jax.block_until_ready(q), jax.block_until_ready(h)
    q_rb, h_rb = _reference_forward(inputs, hidden, raw, jnp.bfloat16)
    q_rf, h_rf = _reference_forward(inputs, hidden, raw, jnp.float32)
    assert q.shape == (batch, n_agents, n_actions) and h.shape == (batch, n_agents, rnn_hidden_dim)
    check(q, q_rb, q_rf, "q")
    check(h, h_rb, h_rf, "h")

    # --- zero-initialized hidden state path (init_hidden equivalent) ---
    q0, h0 = pattention_rnn_agent_forward(inputs, None, prep, dims)
    q0 = jax.block_until_ready(q0)
    q0_rb, h0_rb = _reference_forward(inputs, None, raw, jnp.bfloat16)
    q0_rf, h0_rf = _reference_forward(inputs, None, raw, jnp.float32)
    check(q0, q0_rb, q0_rf, "q0")
    check(h0, h0_rb, h0_rf, "h0")

    # --- short rollout keeping h in the padded kernel layout across steps ---
    T = 3
    n = batch * n_agents
    tm, np_rows = _row_tiling(n)
    xs = jax.random.normal(k_seq, (T, batch, n_agents, input_dim), jnp.float32)
    h_pad = pad_h(None, dims, np_rows)          # padded f32 state, updated in place each step
    h_ref_b = None
    h_ref_f = None
    q_pad = None
    for t in range(T):
        q_pad, h_pad = pattention_rnn_core(pad_x(xs[t], dims, np_rows), h_pad, prep, dims, tm)
        _q_rb, h_ref_b = _reference_forward(xs[t], h_ref_b, raw, jnp.bfloat16)
        _q_rf, h_ref_f = _reference_forward(xs[t], h_ref_f, raw, jnp.float32)
    q_last = jax.block_until_ready(q_pad[:n, :n_actions].reshape(batch, n_agents, n_actions))
    h_last = h_pad[:n, :rnn_hidden_dim].reshape(batch, n_agents, rnn_hidden_dim)
    check(q_last, _q_rb, _q_rf, "q_rollout")
    check(h_last, h_ref_b, h_ref_f, "h_rollout")

    print("KERNEL_OK")
</pallas_src>

<mosaic_0001>
module attributes {stable_mosaic.version = 11 : i64} {
  func.func @kernel(%arg0: i32, %arg1: memref<8x128xbf16, #tpu.memory_space<vmem>>, %arg2: memref<8x128xf32, #tpu.memory_space<vmem>>, %arg3: memref<128x128xbf16, #tpu.memory_space<vmem>>, %arg4: memref<128x128xbf16, #tpu.memory_space<vmem>>, %arg5: memref<128x384xbf16, #tpu.memory_space<vmem>>, %arg6: memref<128x384xbf16, #tpu.memory_space<vmem>>, %arg7: memref<1x384xf32, #tpu.memory_space<vmem>>, %arg8: memref<1x384xf32, #tpu.memory_space<vmem>>, %arg9: memref<128x128xbf16, #tpu.memory_space<vmem>>, %arg10: memref<128x128xbf16, #tpu.memory_space<vmem>>, %arg11: memref<8x128xf32, #tpu.memory_space<vmem>>, %arg12: memref<8x128xf32, #tpu.memory_space<vmem>>) attributes {dimension_semantics = [#tpu.dimension_semantics<parallel>], iteration_bounds = array<i64: 1>, scalar_prefetch = 0 : i64, scratch_operands = 0 : i64, tpu.core_type = #tpu.core_type<tc>, window_params = [{transform_indices = @transform_0, window_bounds = array<i64: 8, 128>}, {transform_indices = @transform_1, window_bounds = array<i64: 8, 128>}, {pipeline_mode = #tpu.pipeline_mode<synchronous>, transform_indices = @transform_2, window_bounds = array<i64: 128, 128>}, {pipeline_mode = #tpu.pipeline_mode<synchronous>, transform_indices = @transform_3, window_bounds = array<i64: 128, 128>}, {pipeline_mode = #tpu.pipeline_mode<synchronous>, transform_indices = @transform_4, window_bounds = array<i64: 128, 384>}, {pipeline_mode = #tpu.pipeline_mode<synchronous>, transform_indices = @transform_5, window_bounds = array<i64: 128, 384>}, {pipeline_mode = #tpu.pipeline_mode<synchronous>, transform_indices = @transform_6, window_bounds = array<i64: 1, 384>}, {pipeline_mode = #tpu.pipeline_mode<synchronous>, transform_indices = @transform_7, window_bounds = array<i64: 1, 384>}, {pipeline_mode = #tpu.pipeline_mode<synchronous>, transform_indices = @transform_8, window_bounds = array<i64: 128, 128>}, {pipeline_mode = #tpu.pipeline_mode<synchronous>, transform_indices = @transform_9, window_bounds = array<i64: 128, 128>}, {transform_indices = @transform_10, window_bounds = array<i64: 8, 128>}, {transform_indices = @transform_11, window_bounds = array<i64: 8, 128>}]} {
    %c0 = arith.constant 0 : index
    %c0_0 = arith.constant 0 : index
    %0 = vector.load %arg1[%c0, %c0_0] : memref<8x128xbf16, #tpu.memory_space<vmem>>, vector<8x128xbf16>
    %c0_1 = arith.constant 0 : index
    %c0_2 = arith.constant 0 : index
    %1 = vector.load %arg2[%c0_1, %c0_2] : memref<8x128xf32, #tpu.memory_space<vmem>>, vector<8x128xf32>
    %c0_3 = arith.constant 0 : index
    %c0_4 = arith.constant 0 : index
    %2 = vector.load %arg3[%c0_3, %c0_4] : memref<128x128xbf16, #tpu.memory_space<vmem>>, vector<128x128xbf16>
    %cst = arith.constant dense<0.000000e+00> : vector<8x128xf32>
    %3 = tpu.matmul %0, %2, %cst {dimension_numbers = #tpu.dot_dimension_numbers<[1], [0], [0], [1], [0, 0, 1, 1], [], []>} : vector<8x128xbf16>, vector<128x128xbf16>, vector<8x128xf32> -> vector<8x128xf32>
    %cst_5 = arith.constant 5.000000e-01 : f32
    %4 = vector.broadcast %cst_5 : f32 to vector<8x128xf32>
    %5 = arith.mulf %4, %3 : vector<8x128xf32>
    %cst_6 = arith.constant 0.707106769 : f32
    %6 = vector.broadcast %cst_6 : f32 to vector<8x128xf32>
    %7 = arith.mulf %3, %6 : vector<8x128xf32>
    %8 = math.erf %7 : vector<8x128xf32>
    %cst_7 = arith.constant 1.000000e+00 : f32
    %9 = vector.broadcast %cst_7 : f32 to vector<8x128xf32>
    %10 = arith.addf %9, %8 : vector<8x128xf32>
    %11 = arith.mulf %5, %10 : vector<8x128xf32>
    %12 = arith.mulf %11, %11 : vector<8x128xf32>
    %cst_8 = arith.constant dense<0.000000e+00> : vector<8xf32>
    %13 = vector.multi_reduction <add>, %12, %cst_8 [1] : vector<8x128xf32> to vector<8xf32>
    %14 = vector.shape_cast %13 : vector<8xf32> to vector<8x1xf32>
    %cst_9 = arith.constant 9.99999996E-13 : f32
    %15 = vector.broadcast %cst_9 : f32 to vector<8x1xf32>
    %16 = arith.addf %14, %15 : vector<8x1xf32>
    %17 = math.rsqrt %16 : vector<8x1xf32>
    %18 = vector.broadcast %17 : vector<8x1xf32> to vector<8x128xf32>
    %19 = arith.mulf %11, %18 : vector<8x128xf32>
    %cst_10 = arith.constant 4.000000e+00 : f32
    %20 = vector.broadcast %cst_10 : f32 to vector<8x128xf32>
    %21 = arith.mulf %19, %20 : vector<8x128xf32>
    %22 = arith.truncf %21 : vector<8x128xf32> to vector<8x128xbf16>
    %c0_11 = arith.constant 0 : index
    %c0_12 = arith.constant 0 : index
    %23 = vector.load %arg4[%c0_11, %c0_12] : memref<128x128xbf16, #tpu.memory_space<vmem>>, vector<128x128xbf16>
    %cst_13 = arith.constant dense<0.000000e+00> : vector<8x128xf32>
    %24 = tpu.matmul %22, %23, %cst_13 {dimension_numbers = #tpu.dot_dimension_numbers<[1], [0], [0], [1], [0, 0, 1, 1], [], []>} : vector<8x128xbf16>, vector<128x128xbf16>, vector<8x128xf32> -> vector<8x128xf32>
    %cst_14 = arith.constant 0.000000e+00 : f32
    %25 = vector.broadcast %cst_14 : f32 to vector<8x128xf32>
    %26 = arith.maximumf %24, %25 : vector<8x128xf32>
    %27 = arith.truncf %26 : vector<8x128xf32> to vector<8x128xbf16>
    %c0_15 = arith.constant 0 : index
    %c0_16 = arith.constant 0 : index
    %28 = vector.load %arg5[%c0_15, %c0_16] : memref<128x384xbf16, #tpu.memory_space<vmem>>, vector<128x384xbf16>
    %cst_17 = arith.constant dense<0.000000e+00> : vector<8x384xf32>
    %29 = tpu.matmul %27, %28, %cst_17 {dimension_numbers = #tpu.dot_dimension_numbers<[1], [0], [0], [1], [0, 0, 1, 1], [], []>} : vector<8x128xbf16>, vector<128x384xbf16>, vector<8x384xf32> -> vector<8x384xf32>
    %c0_18 = arith.constant 0 : index
    %c0_19 = arith.constant 0 : index
    %30 = vector.load %arg7[%c0_18, %c0_19] : memref<1x384xf32, #tpu.memory_space<vmem>>, vector<1x384xf32>
    %31 = vector.broadcast %30 : vector<1x384xf32> to vector<8x384xf32>
    %32 = arith.addf %29, %31 : vector<8x384xf32>
    %33 = arith.truncf %1 : vector<8x128xf32> to vector<8x128xbf16>
    %c0_20 = arith.constant 0 : index
    %c0_21 = arith.constant 0 : index
    %34 = vector.load %arg6[%c0_20, %c0_21] : memref<128x384xbf16, #tpu.memory_space<vmem>>, vector<128x384xbf16>
    %cst_22 = arith.constant dense<0.000000e+00> : vector<8x384xf32>
    %35 = tpu.matmul %33, %34, %cst_22 {dimension_numbers = #tpu.dot_dimension_numbers<[1], [0], [0], [1], [0, 0, 1, 1], [], []>} : vector<8x128xbf16>, vector<128x384xbf16>, vector<8x384xf32> -> vector<8x384xf32>
    %c0_23 = arith.constant 0 : index
    %c0_24 = arith.constant 0 : index
    %36 = vector.load %arg8[%c0_23, %c0_24] : memref<1x384xf32, #tpu.memory_space<vmem>>, vector<1x384xf32>
    %37 = vector.broadcast %36 : vector<1x384xf32> to vector<8x384xf32>
    %38 = arith.addf %35, %37 : vector<8x384xf32>
    %39 = vector.extract_strided_slice %32 {offsets = [0, 0], sizes = [8, 128], strides = [1, 1]} : vector<8x384xf32> to vector<8x128xf32>
    %40 = vector.extract_strided_slice %38 {offsets = [0, 0], sizes = [8, 128], strides = [1, 1]} : vector<8x384xf32> to vector<8x128xf32>
    %41 = arith.addf %39, %40 : vector<8x128xf32>
    %42 = arith.negf %41 : vector<8x128xf32>
    %43 = math.exp %42 : vector<8x128xf32>
    %cst_25 = arith.constant 1.000000e+00 : f32
    %44 = vector.broadcast %cst_25 : f32 to vector<8x128xf32>
    %45 = arith.addf %44, %43 : vector<8x128xf32>
    %46 = arith.divf %44, %45 : vector<8x128xf32>
    %47 = vector.extract_strided_slice %32 {offsets = [0, 128], sizes = [8, 128], strides = [1, 1]} : vector<8x384xf32> to vector<8x128xf32>
    %48 = vector.extract_strided_slice %38 {offsets = [0, 128], sizes = [8, 128], strides = [1, 1]} : vector<8x384xf32> to vector<8x128xf32>
    %49 = arith.addf %47, %48 : vector<8x128xf32>
    %50 = arith.negf %49 : vector<8x128xf32>
    %51 = math.exp %50 : vector<8x128xf32>
    %cst_26 = arith.constant 1.000000e+00 : f32
    %52 = vector.broadcast %cst_26 : f32 to vector<8x128xf32>
    %53 = arith.addf %52, %51 : vector<8x128xf32>
    %54 = arith.divf %52, %53 : vector<8x128xf32>
    %55 = vector.extract_strided_slice %32 {offsets = [0, 256], sizes = [8, 128], strides = [1, 1]} : vector<8x384xf32> to vector<8x128xf32>
    %56 = vector.extract_strided_slice %38 {offsets = [0, 256], sizes = [8, 128], strides = [1, 1]} : vector<8x384xf32> to vector<8x128xf32>
    %57 = arith.mulf %46, %56 : vector<8x128xf32>
    %58 = arith.addf %55, %57 : vector<8x128xf32>
    %59 = math.tanh %58 : vector<8x128xf32>
    %cst_27 = arith.constant 1.000000e+00 : f32
    %60 = vector.broadcast %cst_27 : f32 to vector<8x128xf32>
    %61 = arith.subf %60, %54 : vector<8x128xf32>
    %62 = arith.mulf %61, %59 : vector<8x128xf32>
    %63 = arith.mulf %54, %1 : vector<8x128xf32>
    %64 = arith.addf %62, %63 : vector<8x128xf32>
    %65 = arith.truncf %64 : vector<8x128xf32> to vector<8x128xbf16>
    %c0_28 = arith.constant 0 : index
    %c0_29 = arith.constant 0 : index
    %66 = vector.load %arg9[%c0_28, %c0_29] : memref<128x128xbf16, #tpu.memory_space<vmem>>, vector<128x128xbf16>
    %cst_30 = arith.constant dense<0.000000e+00> : vector<8x128xf32>
    %67 = tpu.matmul %65, %66, %cst_30 {dimension_numbers = #tpu.dot_dimension_numbers<[1], [0], [0], [1], [0, 0, 1, 1], [], []>} : vector<8x128xbf16>, vector<128x128xbf16>, vector<8x128xf32> -> vector<8x128xf32>
    %cst_31 = arith.constant 5.000000e-01 : f32
    %68 = vector.broadcast %cst_31 : f32 to vector<8x128xf32>
    %69 = arith.mulf %68, %67 : vector<8x128xf32>
    %cst_32 = arith.constant 0.707106769 : f32
    %70 = vector.broadcast %cst_32 : f32 to vector<8x128xf32>
    %71 = arith.mulf %67, %70 : vector<8x128xf32>
    %72 = math.erf %71 : vector<8x128xf32>
    %cst_33 = arith.constant 1.000000e+00 : f32
    %73 = vector.broadcast %cst_33 : f32 to vector<8x128xf32>
    %74 = arith.addf %73, %72 : vector<8x128xf32>
    %75 = arith.mulf %69, %74 : vector<8x128xf32>
    %76 = arith.mulf %75, %75 : vector<8x128xf32>
    %cst_34 = arith.constant dense<0.000000e+00> : vector<8xf32>
    %77 = vector.multi_reduction <add>, %76, %cst_34 [1] : vector<8x128xf32> to vector<8xf32>
    %78 = vector.shape_cast %77 : vector<8xf32> to vector<8x1xf32>
    %cst_35 = arith.constant 9.99999996E-13 : f32
    %79 = vector.broadcast %cst_35 : f32 to vector<8x1xf32>
    %80 = arith.addf %78, %79 : vector<8x1xf32>
    %81 = math.rsqrt %80 : vector<8x1xf32>
    %82 = vector.broadcast %81 : vector<8x1xf32> to vector<8x128xf32>
    %83 = arith.mulf %75, %82 : vector<8x128xf32>
    %cst_36 = arith.constant 4.000000e+00 : f32
    %84 = vector.broadcast %cst_36 : f32 to vector<8x128xf32>
    %85 = arith.mulf %83, %84 : vector<8x128xf32>
    %86 = arith.truncf %85 : vector<8x128xf32> to vector<8x128xbf16>
    %c0_37 = arith.constant 0 : index
    %c0_38 = arith.constant 0 : index
    %87 = vector.load %arg10[%c0_37, %c0_38] : memref<128x128xbf16, #tpu.memory_space<vmem>>, vector<128x128xbf16>
    %cst_39 = arith.constant dense<0.000000e+00> : vector<8x128xf32>
    %88 = tpu.matmul %86, %87, %cst_39 {dimension_numbers = #tpu.dot_dimension_numbers<[1], [0], [0], [1], [0, 0, 1, 1], [], []>} : vector<8x128xbf16>, vector<128x128xbf16>, vector<8x128xf32> -> vector<8x128xf32>
    %c0_40 = arith.constant 0 : index
    %c0_41 = arith.constant 0 : index
    %89 = vector.load %arg11[%c0_40, %c0_41] : memref<8x128xf32, #tpu.memory_space<vmem>>, vector<8x128xf32>
    tpu.vector_store %arg11[%c0_40, %c0_41], %88 {strides = array<i32>} : memref<8x128xf32, #tpu.memory_space<vmem>>, vector<8x128xf32>,
    %c0_42 = arith.constant 0 : index
    %c0_43 = arith.constant 0 : index
    %90 = vector.load %arg12[%c0_42, %c0_43] : memref<8x128xf32, #tpu.memory_space<vmem>>, vector<8x128xf32>
    tpu.vector_store %arg12[%c0_42, %c0_43], %64 {strides = array<i32>} : memref<8x128xf32, #tpu.memory_space<vmem>>, vector<8x128xf32>,
    return
  }
  func.func @transform_0(%arg0: i32) -> (i32, i32) {
    %c0_i32 = arith.constant 0 : i32
    %c0_i32_0 = arith.constant 0 : i32
    return %arg0, %c0_i32 : i32, i32
  }
  func.func @transform_1(%arg0: i32) -> (i32, i32) {
    %c0_i32 = arith.constant 0 : i32
    %c0_i32_0 = arith.constant 0 : i32
    return %arg0, %c0_i32 : i32, i32
  }
  func.func @transform_2(%arg0: i32) -> (i32, i32) {
    %c0_i32 = arith.constant 0 : i32
    %c0_i32_0 = arith.constant 0 : i32
    %c0_i32_1 = arith.constant 0 : i32
    return %c0_i32, %c0_i32_0 : i32, i32
  }
  func.func @transform_3(%arg0: i32) -> (i32, i32) {
    %c0_i32 = arith.constant 0 : i32
    %c0_i32_0 = arith.constant 0 : i32
    %c0_i32_1 = arith.constant 0 : i32
    return %c0_i32, %c0_i32_0 : i32, i32
  }
  func.func @transform_4(%arg0: i32) -> (i32, i32) {
    %c0_i32 = arith.constant 0 : i32
    %c0_i32_0 = arith.constant 0 : i32
    %c0_i32_1 = arith.constant 0 : i32
    return %c0_i32, %c0_i32_0 : i32, i32
  }
  func.func @transform_5(%arg0: i32) -> (i32, i32) {
    %c0_i32 = arith.constant 0 : i32
    %c0_i32_0 = arith.constant 0 : i32
    %c0_i32_1 = arith.constant 0 : i32
    return %c0_i32, %c0_i32_0 : i32, i32
  }
  func.func @transform_6(%arg0: i32) -> (i32, i32) {
    %c0_i32 = arith.constant 0 : i32
    %c0_i32_0 = arith.constant 0 : i32
    %c0_i32_1 = arith.constant 0 : i32
    return %c0_i32, %c0_i32_0 : i32, i32
  }
  func.func @transform_7(%arg0: i32) -> (i32, i32) {
    %c0_i32 = arith.constant 0 : i32
    %c0_i32_0 = arith.constant 0 : i32
    %c0_i32_1 = arith.constant 0 : i32
    return %c0_i32, %c0_i32_0 : i32, i32
  }
  func.func @transform_8(%arg0: i32) -> (i32, i32) {
    %c0_i32 = arith.constant 0 : i32
    %c0_i32_0 = arith.constant 0 : i32
    %c0_i32_1 = arith.constant 0 : i32
    return %c0_i32, %c0_i32_0 : i32, i32
  }
  func.func @transform_9(%arg0: i32) -> (i32, i32) {
    %c0_i32 = arith.constant 0 : i32
    %c0_i32_0 = arith.constant 0 : i32
    %c0_i32_1 = arith.constant 0 : i32
    return %c0_i32, %c0_i32_0 : i32, i32
  }
  func.func @transform_10(%arg0: i32) -> (i32, i32) {
    %c0_i32 = arith.constant 0 : i32
    %c0_i32_0 = arith.constant 0 : i32
    return %arg0, %c0_i32 : i32, i32
  }
  func.func @transform_11(%arg0: i32) -> (i32, i32) {
    %c0_i32 = arith.constant 0 : i32
    %c0_i32_0 = arith.constant 0 : i32
    return %arg0, %c0_i32 : i32, i32
  }
}

</mosaic_0001>

<bundles_post_ra>
// kernel: tpu_custom_call.1
= control target key start
LH: loop header
LB: loop body
LE: loop exit
PB: predicated region body
PF: predicated region fallthrough
CT: control target
= control target key end

     0   :  { %17 = vsyncpa [#allocation3], 0  ;;  %s2039_s0 = inlined_call_operand.vmem [shape: bf16[8,128], index: 0, kind: input, shape index: {}]   ;;  %s2040_s1 = inlined_call_operand.hbm [shape: f32[8,128], index: 1, kind: input, shape index: {}, may-alias: {1,11}]   ;;  %s2041_s2 = inlined_call_operand.hbm [shape: bf16[128,128], index: 2, kind: input, shape index: {}]   ;;  %s2042_s3 = inlined_call_operand.hbm [shape: bf16[128,128], index: 3, kind: input, shape index: {}]   ;;  %s2043_s4 = inlined_call_operand.hbm [shape: bf16[128,384], index: 4, kind: input, shape index: {}]   ;;  %s2044_s5 = inlined_call_operand.hbm [shape: bf16[128,384], index: 5, kind: input, shape index: {}]   ;;  %s2045_s6 = inlined_call_operand.vmem [shape: f32[1,384], index: 6, kind: input, shape index: {}]   ;;  %s2046_s7 = inlined_call_operand.vmem [shape: f32[1,384], index: 7, kind: input, shape index: {}]   ;;  %s2047_s8 = inlined_call_operand.hbm [shape: bf16[128,128], index: 8, kind: input, shape index: {}]   ;;  %s2048_s9 = inlined_call_operand.hbm [shape: bf16[128,128], index: 9, kind: input, shape index: {}]   ;;  %s2049_s10 = inlined_call_operand.hbm [shape: f32[8,128], index: 10, kind: output, shape index: {0}]   ;;  %s2050_s11 = inlined_call_operand.hbm [shape: f32[8,128], index: 11, kind: output, shape index: {1}, may-alias: {1,11}]  }
   0x1   :  { %18 = vsyncpa [#allocation6], 0 }
   0x2   :  { %19 = vsyncpa [#allocation9], 0 }
   0x3   :  { %20 = vsyncpa [#allocation12], 0 }
   0x4   :  { %21 = vsyncpa [#allocation4], 0 }
   0x5   :  { %22 = vsyncpa [#allocation16], 0  ;;  %s1756_s17 = smov [#allocation5]   ;;  %s1546_s21 = scalar_lea.hbm %s2041_s2, 1024 }
   0x6   :  { %s40_s18 = sshll.u32 %s1756_s17, 4  ;;  %p1547_p0 = scmp.ne.s32.totalorder %s2041_s2, %s1546_s21  ;;  %s41_s18 = int_to_ptr.vmem [resolvable:$true] %s40_s18 }
   0x7   :  { %p1550_p1 = scmp.lt.u32.totalorder %s1546_s21, %s2041_s2 }
   0x9   :  { %p1552_p2 = pnand %p1550_p1, %p1547_p0 }
   0xb   :  { %1555 = shalt.err (!%p1552_p2)
}
   0xc   :  { %s1556_s26 = scalar_lea.vmem %s41_s18, 1024  ;;  %p1561_p4 = scmp.lt.s32.totalorder %s41_s18, %s41_s18 }
   0xd   :  { %p1557_p3 = scmp.ne.s32.totalorder %s41_s18, %s1556_s26  ;;  %p1562_p5 = scmp.lt.s32.totalorder %s1556_s26, %s1556_s26 }
   0xf   :  { %p1563_p6 = por %p1562_p5, %p1561_p4 }
  0x11   :  { %p1564_p7 = pnand %p1563_p6, %p1557_p3 }
  0x13   :  { %1567 = shalt.err (!%p1564_p7)
}
  0x14   :  { %s1757_s27 = smov 64   ;;  %s1758_s28 = smov 4  }
  0x15   :  { %46 = dma.hbm_to_vmem [thread:$0]  %s2041_s2, 1024, %s41_s18, [#allocation6], %s1757_s27, %s1757_s27, %s1758_s28  }
  0x16   :  { %s1759_s12 = smov [#allocation8]   ;;  %s1568_s16 = scalar_lea.hbm %s2043_s4, 3072 }
  0x17   :  { %s64_s13 = sshll.u32 %s1759_s12, 4  ;;  %p1569_p8 = scmp.ne.s32.totalorder %s2043_s4, %s1568_s16  ;;  %s65_s13 = int_to_ptr.vmem [resolvable:$true] %s64_s13 }
  0x18   :  { %p1572_p9 = scmp.lt.u32.totalorder %s1568_s16, %s2043_s4 }
  0x1a   :  { %p1574_p10 = pnand %p1572_p9, %p1569_p8 }
  0x1c   :  { %1577 = shalt.err (!%p1574_p10)
}
  0x1d   :  { %s1578_s22 = scalar_lea.vmem %s65_s13, 3072  ;;  %p1583_p12 = scmp.lt.s32.totalorder %s65_s13, %s65_s13 }
  0x1e   :  { %p1579_p11 = scmp.ne.s32.totalorder %s65_s13, %s1578_s22  ;;  %p1584_p13 = scmp.lt.s32.totalorder %s1578_s22, %s1578_s22 }
  0x20   :  { %p1585_p0 = por %p1584_p13, %p1583_p12 }
  0x22   :  { %p1586_p1 = pnand %p1585_p0, %p1579_p11 }
  0x24   :  { %1589 = shalt.err (!%p1586_p1)
}
  0x25   :  { %s1760_s2 = smov 192   ;;  %s1761_s18 = smov 12  }
  0x26   :  { %70 = dma.hbm_to_vmem [thread:$0]  %s2043_s4, 3072, %s65_s13, [#allocation9], %s1760_s2, %s1760_s2, %s1761_s18  }
  0x27   :  { %s1762_s25 = smov [#allocation11]   ;;  %s1763_s29 = smov [#allocation2]  }
  0x28   :  { %s92_s26 = sshll.u32 %s1762_s25, 4  ;;  %s31_s30 = sshll.u32 %s1763_s29, 4  ;;  %s93_s26 = int_to_ptr.vmem [resolvable:$true] %s92_s26  ;;  %s32_s30 = int_to_ptr.vmem [resolvable:$true] %s31_s30 }
  0x29   :  { %s1590_s15 = scalar_lea.hbm %s2047_s8, 1024 }
  0x2a   :  { %p1591_p2 = scmp.ne.s32.totalorder %s2047_s8, %s1590_s15  ;;  %p1594_p3 = scmp.lt.u32.totalorder %s1590_s15, %s2047_s8 }
  0x2c   :  { %p1596_p4 = pnand %p1594_p3, %p1591_p2 }
  0x2e   :  { %1599 = shalt.err (!%p1596_p4)
}
  0x2f   :  { %s1600_s4 = scalar_lea.vmem %s93_s26, 1024  ;;  %p1605_p6 = scmp.lt.s32.totalorder %s93_s26, %s93_s26 }
  0x30   :  { %p1601_p5 = scmp.ne.s32.totalorder %s93_s26, %s1600_s4  ;;  %p1606_p7 = scmp.lt.s32.totalorder %s1600_s4, %s1600_s4 }
  0x32   :  { %p1607_p8 = por %p1606_p7, %p1605_p6 }
  0x34   :  { %p1608_p9 = pnand %p1607_p8, %p1601_p5 }
  0x36   :  { %1611 = shalt.err (!%p1608_p9)
}
  0x37   :  { %98 = dma.hbm_to_vmem [thread:$0]  %s2047_s8, 1024, %s93_s26, [#allocation12], %s1757_s27, %s1757_s27, %s1758_s28  }
  0x38   :  { %s1612_s24 = scalar_lea.hbm %s2040_s1, 128 }
  0x39   :  { %p1613_p10 = scmp.ne.s32.totalorder %s2040_s1, %s1612_s24  ;;  %p1616_p11 = scmp.lt.u32.totalorder %s1612_s24, %s2040_s1 }
  0x3b   :  { %p1618_p12 = pnand %p1616_p11, %p1613_p10 }
  0x3d   :  { %1621 = shalt.err (!%p1618_p12)
}
  0x3e   :  { %s1622_s15 = scalar_lea.vmem %s32_s30, 128  ;;  %p1627_p0 = scmp.lt.s32.totalorder %s32_s30, %s32_s30 }
  0x3f   :  { %p1623_p13 = scmp.ne.s32.totalorder %s32_s30, %s1622_s15  ;;  %p1628_p1 = scmp.lt.s32.totalorder %s1622_s15, %s1622_s15 }
  0x41   :  { %p1629_p2 = por %p1628_p1, %p1627_p0 }
  0x43   :  { %p1630_p3 = pnand %p1629_p2, %p1623_p13 }
  0x45   :  { %1633 = shalt.err (!%p1630_p3)
}
  0x46   :  { %34 = dma.hbm_to_vmem [thread:$0]  %s2040_s1, 128, %s32_s30, [#allocation3]  }
  0x47   :  { %s1764_s16 = smov [#allocation7]   ;;  %s1765_s19 = smov [#allocation10]  }
  0x48   :  { %s52_s17 = sshll.u32 %s1764_s16, 4  ;;  %s76_s20 = sshll.u32 %s1765_s19, 4  ;;  %s53_s17 = int_to_ptr.vmem [resolvable:$true] %s52_s17  ;;  %s1889_s20 = int_to_ptr.vmem [resolvable:$true] %s76_s20 }
  0x49   :  { %s1634_s21 = scalar_lea.hbm %s2042_s3, 1024 }
  0x4a   :  { %p1635_p4 = scmp.ne.s32.totalorder %s2042_s3, %s1634_s21  ;;  %p1638_p5 = scmp.lt.u32.totalorder %s1634_s21, %s2042_s3 }
  0x4c   :  { %p1640_p6 = pnand %p1638_p5, %p1635_p4 }
  0x4e   :  { %1643 = shalt.err (!%p1640_p6)
}
  0x4f   :  { %s1644_s1 = scalar_lea.vmem %s53_s17, 1024  ;;  %p1649_p8 = scmp.lt.s32.totalorder %s53_s17, %s53_s17 }
  0x50   :  { %p1645_p7 = scmp.ne.s32.totalorder %s53_s17, %s1644_s1  ;;  %p1650_p9 = scmp.lt.s32.totalorder %s1644_s1, %s1644_s1 }
  0x52   :  { %p1651_p10 = por %p1650_p9, %p1649_p8 }
  0x54   :  { %p1652_p11 = pnand %p1651_p10, %p1645_p7 }
  0x56   :  { %1655 = shalt.err (!%p1652_p11)
}
  0x57   :  { %58 = dma.hbm_to_vmem [thread:$0]  %s2042_s3, 1024, %s53_s17, [#allocation6], %s1757_s27, %s1757_s27, %s1758_s28  }
  0x58   :  { %s1656_s15 = scalar_lea.hbm %s2044_s5, 3072 }
  0x59   :  { %p1657_p12 = scmp.ne.s32.totalorder %s2044_s5, %s1656_s15  ;;  %p1660_p13 = scmp.lt.u32.totalorder %s1656_s15, %s2044_s5 }
  0x5b   :  { %p1662_p0 = pnand %p1660_p13, %p1657_p12 }
  0x5d   :  { %1665 = shalt.err (!%p1662_p0)
}
  0x5e   :  { %s1666_s4 = scalar_lea.vmem %s1889_s20, 3072  ;;  %p1671_p2 = scmp.lt.s32.totalorder %s1889_s20, %s1889_s20 }
  0x5f   :  { %p1667_p1 = scmp.ne.s32.totalorder %s1889_s20, %s1666_s4  ;;  %p1672_p3 = scmp.lt.s32.totalorder %s1666_s4, %s1666_s4 }
  0x61   :  { %p1673_p4 = por %p1672_p3, %p1671_p2 }
  0x63   :  { %p1674_p5 = pnand %p1673_p4, %p1667_p1 }
  0x65   :  { %1677 = shalt.err (!%p1674_p5)
}
  0x66   :  { %82 = dma.hbm_to_vmem [thread:$0]  %s2044_s5, 3072, %s1889_s20, [#allocation9], %s1760_s2, %s1760_s2, %s1761_s18  }
  0x67   :  { %s1766_s13 = smov [#allocation13]   ;;  %s1678_s24 = scalar_lea.hbm %s2048_s9, 1024 }
  0x68   :  { %s104_s21 = sshll.u32 %s1766_s13, 4  ;;  %p1679_p6 = scmp.ne.s32.totalorder %s2048_s9, %s1678_s24  ;;  %s105_s21 = int_to_ptr.vmem [resolvable:$true] %s104_s21 }
  0x69   :  { %p1682_p7 = scmp.lt.u32.totalorder %s1678_s24, %s2048_s9 }
  0x6b   :  { %p1684_p8 = pnand %p1682_p7, %p1679_p6 }
  0x6d   :  { %1687 = shalt.err (!%p1684_p8)
}
  0x6e   :  { %s1688_s12 = scalar_lea.vmem %s105_s21, 1024  ;;  %p1693_p10 = scmp.lt.s32.totalorder %s105_s21, %s105_s21 }
  0x6f   :  { %p1689_p9 = scmp.ne.s32.totalorder %s105_s21, %s1688_s12  ;;  %p1694_p11 = scmp.lt.s32.totalorder %s1688_s12, %s1688_s12 }
  0x71   :  { %p1695_p12 = por %p1694_p11, %p1693_p10 }
  0x73   :  { %p1696_p13 = pnand %p1695_p12, %p1689_p9 }
  0x75   :  { %1699 = shalt.err (!%p1696_p13)
}
  0x76   :  { %110 = dma.hbm_to_vmem [thread:$0]  %s2048_s9, 1024, %s105_s21, [#allocation12], %s1757_s27, %s1757_s27, %s1758_s28  }
  0x77   :  { %1744 = dma.done.wait [#allocation3], 128  }
  0x78   :  { %1745 = vsyncadd [#allocation3], 4294967168 }
  0x79   :  { %1746 = dma.done.wait [#allocation6], 2048  }
  0x7a   :  { %1747 = vsyncadd [#allocation6], 4294965248 }
  0x7b   :  { %1748 = dma.done.wait [#allocation9], 6144  }
  0x7c   :  { %1749 = vsyncadd [#allocation9], 4294961152 }
  0x7d   :  { %1750 = dma.done.wait [#allocation12], 2048  }
  0x7e   :  { %1751 = vsyncadd [#allocation12], 4294965248  ;;  %v1767_v0 = vmov 0.0   ;;  %vm1768_vm0 = vmmov 0   ;;  %v1432_v1 = vld [vmem:[#allocation5] sm:$0xff]   ;;  %v1433_v2 = vld [vmem:[#allocation5 + $0x8] sm:$0xff]  }
  0x7f   :  { %1288 = vmatprep.subr.bf16.mxu0 %v1767_v0  ;;  %1304 = vmatprep.mubr.msk.bf16.mxu0 %vm1768_vm0, %v1767_v0  ;;  %v1434_v3 = vld [vmem:[#allocation5 + $0x10] sm:$0xff]   ;;  %v1435_v4 = vld [vmem:[#allocation5 + $0x18] sm:$0xff]   ;;  %v1436_v5 = vld [vmem:[#allocation5 + $0x20] sm:$0xff]   ;;  %v1769_v59 = vmov 0  }
  0x80   :  { %1308 = vmatprep.subr.bf16.mxu1 %v1767_v0  ;;  %1324 = vmatprep.mubr.msk.bf16.mxu1 %vm1768_vm0, %v1767_v0  ;;  %v1437_v6 = vld [vmem:[#allocation5 + $0x28] sm:$0xff]   ;;  %v1438_v7 = vld [vmem:[#allocation5 + $0x30] sm:$0xff]   ;;  %v1439_v8 = vld [vmem:[#allocation5 + $0x38] sm:$0xff]  }
  0x81   :  { %1289 = vmatpush3.bf16.msra.mxu0 %v1432_v1  ;;  %v133_v9 = vld [vmem:[%s2039_s0] sm:$0xf]  ;;  %v1440_v10 = vld [vmem:[#allocation7] sm:$0xff]   ;;  %v1441_v11 = vld [vmem:[#allocation7 + $0x8] sm:$0xff]  }
  0x82   :  { %1290 = vmatprep.subr.bf16.mxu0 %v1767_v0  ;;  %1309 = vmatpush3.bf16.msra.mxu1 %v1440_v10  ;;  %v1442_v12 = vld [vmem:[#allocation7 + $0x10] sm:$0xff]   ;;  %v1443_v23 = vld [vmem:[#allocation7 + $0x18] sm:$0xff]   ;;  %v1444_v24 = vld [vmem:[#allocation7 + $0x20] sm:$0xff]  }
  0x83   :  { %1310 = vmatprep.subr.bf16.mxu1 %v1767_v0  ;;  %v1445_v25 = vld [vmem:[#allocation7 + $0x28] sm:$0xff]   ;;  %v1446_v26 = vld [vmem:[#allocation7 + $0x30] sm:$0xff]   ;;  %v1447_v27 = vld [vmem:[#allocation7 + $0x38] sm:$0xff]  }
  0x84   :  { %v1448_v28 = vld [vmem:[#allocation8] ss:$12 sps:$4 sm:$0xff]   ;;  %v1450_v29 = vld [vmem:[#allocation8 + $0x4] ss:$12 sps:$4 sm:$0xff]   ;;  %v1454_v30 = vld [vmem:[#allocation8 + $0x1c] ss:$12 sps:$4 sm:$0xff]  }
  0x85   :  { %1291 = vmatpush3.bf16.msra.mxu0 %v1433_v2  ;;  %v1452_v31 = vld [vmem:[#allocation8 + $0x18] ss:$12 sps:$4 sm:$0xff]   ;;  %v1458_v32 = vld [vmem:[#allocation8 + $0x34] ss:$12 sps:$4 sm:$0xff]   ;;  %v1456_v33 = vld [vmem:[#allocation8 + $0x30] ss:$12 sps:$4 sm:$0xff]  }
  0x86   :  { %1292 = vmatprep.subr.bf16.mxu0 %v1767_v0  ;;  %1311 = vmatpush3.bf16.msra.mxu1 %v1441_v11  ;;  %v1462_v34 = vld [vmem:[#allocation8 + $0x4c] ss:$12 sps:$4 sm:$0xff]   ;;  %v1460_v35 = vld [vmem:[#allocation8 + $0x48] ss:$12 sps:$4 sm:$0xff]   ;;  %v1466_v36 = vld [vmem:[#allocation8 + $0x64] ss:$12 sps:$4 sm:$0xff]  }
  0x87   :  { %1312 = vmatprep.subr.bf16.mxu1 %v1767_v0  ;;  %v1464_v37 = vld [vmem:[#allocation8 + $0x60] ss:$12 sps:$4 sm:$0xff]   ;;  %v1470_v38 = vld [vmem:[#allocation8 + $0x7c] ss:$12 sps:$4 sm:$0xff]   ;;  %v1468_v39 = vld [vmem:[#allocation8 + $0x78] ss:$12 sps:$4 sm:$0xff]  }
  0x88   :  { %v1474_v40 = vld [vmem:[#allocation8 + $0x94] ss:$12 sps:$4 sm:$0xff]   ;;  %v1472_v41 = vld [vmem:[#allocation8 + $0x90] ss:$12 sps:$4 sm:$0xff]   ;;  %v1459_v50 = vld [vmem:[#allocation8 + $0x38] ss:$12 sps:$4 sm:$0xff]  }
  0x89   :  { %1293 = vmatpush3.bf16.msra.mxu0 %v1434_v3  ;;  %v1451_v47 = vld [vmem:[#allocation8 + $0x8] ss:$12 sps:$4 sm:$0xff]   ;;  %v1455_v49 = vld [vmem:[#allocation8 + $0x20] ss:$12 sps:$4 sm:$0xff]   ;;  %v1463_v51 = vld [vmem:[#allocation8 + $0x50] ss:$12 sps:$4 sm:$0xff]  }
  0x8a   :  { %1294 = vmatprep.subr.bf16.mxu0 %v1767_v0  ;;  %1313 = vmatpush3.bf16.msra.mxu1 %v1442_v12  ;;  %v1467_v52 = vld [vmem:[#allocation8 + $0x68] ss:$12 sps:$4 sm:$0xff]   ;;  %v1471_v53 = vld [vmem:[#allocation8 + $0x80] ss:$12 sps:$4 sm:$0xff]   ;;  %v1475_v54 = vld [vmem:[#allocation8 + $0x98] ss:$12 sps:$4 sm:$0xff]  }
  0x8b   :  { %1314 = vmatprep.subr.bf16.mxu1 %v1767_v0  ;;  %v1478_v55 = vld [vmem:[#allocation8 + $0xac] ss:$12 sps:$4 sm:$0xff]   ;;  %v1476_v56 = vld [vmem:[#allocation8 + $0xa8] ss:$12 sps:$4 sm:$0xff]   ;;  %v1479_v57 = vld [vmem:[#allocation8 + $0xb0] ss:$12 sps:$4 sm:$0xff]  }
  0x8c   :  { %v1482_v58 = vld [vmem:[#allocation10 + $0x4] ss:$12 sps:$4 sm:$0xff]   ;;  %v1480_v1 = vld [vmem:[#allocation10] ss:$12 sps:$4 sm:$0xff]   ;;  %v1501_v2 = vld [vmem:[#allocation10 + $0x8] ss:$12 sps:$4 sm:$0xff]  }
  0x8d   :  { %1295 = vmatpush3.bf16.msra.mxu0 %v1435_v4  ;;  %v1506_v10 = vld [vmem:[#allocation10 + $0x38] ss:$12 sps:$4 sm:$0xff]   ;;  %v1489_v12 = vld [vmem:[#allocation10 + $0x48] ss:$12 sps:$4 sm:$0xff]  }
  0x8e   :  { %1296 = vmatprep.subr.bf16.mxu0 %v1767_v0  ;;  %1315 = vmatpush3.bf16.msra.mxu1 %v1443_v23  ;;  %v1491_v11 = vld [vmem:[#allocation10 + $0x4c] ss:$12 sps:$4 sm:$0xff]  }
  0x8f   :  { %1316 = vmatprep.subr.bf16.mxu1 %v1767_v0  ;;  %v1504_v23 = vld [vmem:[#allocation10 + $0xac] ss:$12 sps:$4 sm:$0xff]  }
  0x91   :  { %1297 = vmatpush3.bf16.msra.mxu0 %v1436_v5  ;;  %v1485_v5 = vld [vmem:[#allocation10 + $0x1c] ss:$12 sps:$4 sm:$0xff]  }
  0x92   :  { %1298 = vmatprep.subr.bf16.mxu0 %v1767_v0  ;;  %1317 = vmatpush3.bf16.msra.mxu1 %v1444_v24  ;;  %v1502_v24 = vld [vmem:[#allocation10 + $0xa8] ss:$12 sps:$4 sm:$0xff]  }
  0x93   :  { %1318 = vmatprep.subr.bf16.mxu1 %v1767_v0 }
  0x95   :  { %1299 = vmatpush3.bf16.msra.mxu0 %v1437_v6  ;;  %v1483_v6 = vld [vmem:[#allocation10 + $0x18] ss:$12 sps:$4 sm:$0xff]  }
  0x96   :  { %1300 = vmatprep.subr.bf16.mxu0 %v1767_v0  ;;  %1319 = vmatpush3.bf16.msra.mxu1 %v1445_v25  ;;  %v1983_v25 = vld [vmem:[#allocation2] sm:$0xff] }
  0x97   :  { %1320 = vmatprep.subr.bf16.mxu1 %v1767_v0 }
  0x99   :  { %1301 = vmatpush3.bf16.msra.mxu0 %v1438_v7  ;;  %v1505_v7 = vld [vmem:[#allocation10 + $0x20] ss:$12 sps:$4 sm:$0xff]  }
  0x9a   :  { %1302 = vmatprep.subr.bf16.mxu0 %v1767_v0  ;;  %1321 = vmatpush3.bf16.msra.mxu1 %v1446_v26  ;;  %v1511_v26 = vld [vmem:[#allocation10 + $0xb0] ss:$12 sps:$4 sm:$0xff]  }
  0x9b   :  { %1322 = vmatprep.subr.bf16.mxu1 %v1767_v0 }
  0x9d   :  { %1303 = vmatpush3.bf16.msra.mxu0 %v1439_v8  ;;  %v1488_v8 = vld [vmem:[#allocation10 + $0x34] ss:$12 sps:$4 sm:$0xff]  }
  0x9e   :  { %1323 = vmatpush3.bf16.msra.mxu1 %v1447_v27  ;;  %535 = vmatprep.subr.bf16.mxu0 %v1450_v29  ;;  %v616_v27 = vpack.c.bf16 %v1983_v25, %v1983_v25  ;;  %v1513_v29 = vld [vmem:[#allocation11 + $0x8] sm:$0xff]  }
  0x9f   :  { %1328 = vmatprep.subr.bf16.mxu1 %v1767_v0 }
  0xa0   :  { %1305 = vmatmul.mubr.bf16.vlgmr.msra.gmra.mrb[0].mxu0 %v133_v9  ;;  %v1486_v9 = vld [vmem:[#allocation10 + $0x30] ss:$12 sps:$4 sm:$0xff]  }
  0xa1   :  { %536 = vmatpush1.bf16.msra.mxu0 %v1448_v28  ;;  %567 = vmatprep.mubr.bf16.mxu0 %v1769_v59  ;;  %v1512_v28 = vld [vmem:[#allocation11] sm:$0xff]  }
  0xa2   :  { %537 = vmatprep.subr.bf16.mxu0 %v1454_v30  ;;  %v1514_v30 = vld [vmem:[#allocation11 + $0x10] sm:$0xff]  }
  0xa5   :  { %538 = vmatpush1.bf16.msra.mxu0 %v1452_v31  ;;  %v1515_v31 = vld [vmem:[#allocation11 + $0x18] sm:$0xff]  }
  0xa6   :  { %539 = vmatprep.subr.bf16.mxu0 %v1458_v32  ;;  %v1516_v32 = vld [vmem:[#allocation11 + $0x20] sm:$0xff]  }
  0xa9   :  { %540 = vmatpush1.bf16.msra.mxu0 %v1456_v33  ;;  %v1517_v33 = vld [vmem:[#allocation11 + $0x28] sm:$0xff]  }
  0xaa   :  { %541 = vmatprep.subr.bf16.mxu0 %v1462_v34  ;;  %v1518_v34 = vld [vmem:[#allocation11 + $0x30] sm:$0xff]  }
  0xad   :  { %542 = vmatpush1.bf16.msra.mxu0 %v1460_v35  ;;  %v1519_v35 = vld [vmem:[#allocation11 + $0x38] sm:$0xff]  }
  0xae   :  { %543 = vmatprep.subr.bf16.mxu0 %v1466_v36 }
  0xb1   :  { %544 = vmatpush1.bf16.msra.mxu0 %v1464_v37 }
  0xb2   :  { %545 = vmatprep.subr.bf16.mxu0 %v1470_v38 }
  0xb5   :  { %546 = vmatpush1.bf16.msra.mxu0 %v1468_v39 }
  0xb6   :  { %547 = vmatprep.subr.bf16.mxu0 %v1474_v40  ;;  %v392_v40 = vlaneseq }
  0xb9   :  { %548 = vmatpush1.bf16.msra.mxu0 %v1472_v41  ;;  %v393_v41 = vshrl.u32 %v392_v40, 7 }
  0xba   :  { %549 = vmatprep.subr.bf16.mxu0 %v1478_v55 }
  0xbd   :  { %550 = vmatpush1.bf16.msra.mxu0 %v1476_v56 }
  0xbe   :  { %794 = vmatprep.subr.bf16.mxu0 %v1482_v58 }
 0x173   :  { %v233_v13 = vpop.f32.mrb[0].mxu0 }
 0x174   :  { %v240_v14 = vmul.f32 0.70710677, %v233_v13  ;;  %v1306_v15 = vpop.f32.mrb[1].mxu0  ;;  %v239_v19 = vmul.f32 0.5, %v233_v13  ;;  %v1507_v13 = vld [vmem:[#allocation10 + $0x50] ss:$12 sps:$4 sm:$0xff]  }
 0x175   :  { %v236_v16 = vpop.f32.mrb[2].mxu0  ;;  %v1492_v15 = vld [vmem:[#allocation10 + $0x60] ss:$12 sps:$4 sm:$0xff]  }
 0x176   :  { %1528 = verf.f32 %v240_v14  ;;  %v1307_v17 = vpop.f32.mrb[3].mxu0  ;;  %v1494_v14 = vld [vmem:[#allocation10 + $0x64] ss:$12 sps:$4 sm:$0xff]   ;;  %v1508_v16 = vld [vmem:[#allocation10 + $0x68] ss:$12 sps:$4 sm:$0xff]  }
 0x177   :  { %v1497_v17 = vld [vmem:[#allocation10 + $0x7c] ss:$12 sps:$4 sm:$0xff]  }
 0x180   :  { %v1529_v18 = vpop.eup %1528 }
 0x181   :  { %v242_v20 = vadd.f32 1.0, %v1529_v18  ;;  %v1495_v18 = vld [vmem:[#allocation10 + $0x78] ss:$12 sps:$4 sm:$0xff]  }
 0x183   :  { %v243_v21 = vmul.f32 %v242_v20, %v239_v19  ;;  %v1509_v19 = vld [vmem:[#allocation10 + $0x80] ss:$12 sps:$4 sm:$0xff]  }
 0x184   :  { %v1500_v20 = vld [vmem:[#allocation10 + $0x94] ss:$12 sps:$4 sm:$0xff]  }
 0x185   :  { %v244_v22 = vmul.f32 %v243_v21, %v243_v21 }
 0x187   :  { %245 = vadd.xlane.f32.xlu0 %v244_v22  ;;  %v1510_v22 = vld [vmem:[#allocation10 + $0x98] ss:$12 sps:$4 sm:$0xff]  }
 0x214   :  { %v246_v42 = vpop.xlane.xlu0 %245 }
 0x215   :  { %v247_v43 = vadd.f32 1e-12, %v246_v42  ;;  %v394_v42 = vsub.s32 0, %v393_v41 }
 0x217   :  { %1530 = vrsqrt.f32 %v247_v43  ;;  %v649_v43 = vld [vmem:[%s2046_s7] sm:$0x7] }
 0x221   :  { %v1531_v44 = vpop.eup %1530 }
 0x222   :  { %v249_v45 = vmul.f32 %v1531_v44, %v243_v21  ;;  %v1498_v21 = vld [vmem:[#allocation10 + $0x90] ss:$12 sps:$4 sm:$0xff]   ;;  %v390_v44 = vld [vmem:[%s2045_s6] sm:$0x7]  ;;  %s1770_s6 = smov [#allocation15]  }
 0x223   :  { %s1136_s7 = sshll.u32 %s1770_s6, 4  ;;  %s1137_s7 = int_to_ptr.vmem [resolvable:$true] %s1136_s7 }
 0x224   :  { %v250_v46 = vmul.f32 4.0, %v249_v45  ;;  %v398_v45 = vsub.s32 1, %v393_v41  ;;  %s1700_s14 = scalar_lea.vmem %s1137_s7, 128  ;;  %p1705_p1 = scmp.lt.s32.totalorder %s1137_s7, %s1137_s7 }
 0x225   :  { %p1701_p0 = scmp.ne.s32.totalorder %s1137_s7, %s1700_s14  ;;  %p1706_p2 = scmp.lt.s32.totalorder %s1700_s14, %s1700_s14 }
 0x226   :  { %v251_v48 = vpack.c.bf16 %v250_v46, %v250_v46  ;;  %v395_v46 = vrot.slane %v390_v44, %v394_v42 }
 0x227   :  { %p1707_p3 = por %p1706_p2, %p1705_p1 }
 0x228   :  { %1325 = vmatmul.mubr.bf16.vlgmr.msra.gmra.mrb[0].mxu1 %v251_v48  ;;  %v399_v48 = vrot.slane %v390_v44, %v398_v45 }
 0x229   :  { %1329 = vmatpush3.bf16.msra.mxu1 %v1451_v47  ;;  %1344 = vmatprep.mubr.msk.bf16.mxu1 %vm1768_vm0, %v1767_v0  ;;  %v654_v47 = vrot.slane %v649_v43, %v394_v42  ;;  %p1708_p4 = pnand %p1707_p3, %p1701_p0 }
 0x22a   :  { %1330 = vmatprep.subr.bf16.mxu1 %v1767_v0 }
 0x22d   :  { %1331 = vmatpush3.bf16.msra.mxu1 %v1455_v49  ;;  %v658_v49 = vrot.slane %v649_v43, %v398_v45 }
 0x22e   :  { %1332 = vmatprep.subr.bf16.mxu1 %v1767_v0 }
 0x231   :  { %1333 = vmatpush3.bf16.msra.mxu1 %v1459_v50  ;;  %v1408_v50 = vadd.f32 %v654_v47, %v395_v46 }
 0x232   :  { %1334 = vmatprep.subr.bf16.mxu1 %v1767_v0 }
 0x235   :  { %1335 = vmatpush3.bf16.msra.mxu1 %v1463_v51 }
 0x236   :  { %1336 = vmatprep.subr.bf16.mxu1 %v1767_v0 }
 0x239   :  { %1337 = vmatpush3.bf16.msra.mxu1 %v1467_v52  ;;  %v1410_v52 = vadd.f32 %v658_v49, %v399_v48 }
 0x23a   :  { %1338 = vmatprep.subr.bf16.mxu1 %v1767_v0 }
 0x23d   :  { %1339 = vmatpush3.bf16.msra.mxu1 %v1471_v53 }
 0x23e   :  { %1340 = vmatprep.subr.bf16.mxu1 %v1767_v0 }
 0x241   :  { %1341 = vmatpush3.bf16.msra.mxu1 %v1475_v54 }
 0x242   :  { %1342 = vmatprep.subr.bf16.mxu1 %v1767_v0 }
 0x245   :  { %1343 = vmatpush3.bf16.msra.mxu1 %v1479_v57 }
 0x246   :  { %1348 = vmatprep.subr.bf16.mxu1 %v1767_v0 }
 0x2fb   :  { %v350_v60 = vpop.f32.mrb[0].mxu1 }
 0x2fc   :  { %v356_v61 = vmax.f32 %v350_v60, 0.0  ;;  %v1326_v62 = vpop.f32.mrb[1].mxu1 }
 0x2fd   :  { %v353_v63 = vpop.f32.mrb[2].mxu1 }
 0x2fe   :  { %v357_v3 = vpack.c.bf16 %v356_v61, %v356_v61  ;;  %v1327_v4 = vpop.f32.mrb[3].mxu1 }
 0x300   :  { %568 = vmatmul.mubr.bf16.vlgmr.msra.gmra.mrb[4].mxu0 %v357_v3  ;;  %1345 = vmatmul.mubr.bf16.vlgmr.msra.gmra.mrb[4].mxu1 %v357_v3  ;;  %v402_v3 = vsub.s32 2, %v393_v41 }
 0x301   :  { %795 = vmatpush1.bf16.msra.mxu0 %v1480_v1  ;;  %1349 = vmatpush3.bf16.msra.mxu1 %v1501_v2 }
 0x302   :  { %796 = vmatprep.subr.bf16.mxu0 %v1485_v5  ;;  %1350 = vmatprep.subr.bf16.mxu1 %v1767_v0  ;;  %v662_v4 = vrot.slane %v649_v43, %v402_v3 }
 0x303   :  { %826 = vmatprep.mubr.bf16.mxu0 %v1769_v59  ;;  %1364 = vmatprep.mubr.msk.bf16.mxu1 %vm1768_vm0, %v1767_v0 }
 0x305   :  { %797 = vmatpush1.bf16.msra.mxu0 %v1483_v6  ;;  %1351 = vmatpush3.bf16.msra.mxu1 %v1505_v7  ;;  %v403_v6 = vrot.slane %v390_v44, %v402_v3 }
 0x306   :  { %798 = vmatprep.subr.bf16.mxu0 %v1488_v8  ;;  %1352 = vmatprep.subr.bf16.mxu1 %v1767_v0 }
 0x309   :  { %799 = vmatpush1.bf16.msra.mxu0 %v1486_v9  ;;  %1353 = vmatpush3.bf16.msra.mxu1 %v1506_v10 }
 0x30a   :  { %800 = vmatprep.subr.bf16.mxu0 %v1491_v11  ;;  %1354 = vmatprep.subr.bf16.mxu1 %v1767_v0 }
 0x30d   :  { %801 = vmatpush1.bf16.msra.mxu0 %v1489_v12  ;;  %1355 = vmatpush3.bf16.msra.mxu1 %v1507_v13 }
 0x30e   :  { %802 = vmatprep.subr.bf16.mxu0 %v1494_v14  ;;  %1356 = vmatprep.subr.bf16.mxu1 %v1767_v0 }
 0x311   :  { %803 = vmatpush1.bf16.msra.mxu0 %v1492_v15  ;;  %1357 = vmatpush3.bf16.msra.mxu1 %v1508_v16 }
 0x312   :  { %804 = vmatprep.subr.bf16.mxu0 %v1497_v17  ;;  %1358 = vmatprep.subr.bf16.mxu1 %v1767_v0 }
 0x315   :  { %805 = vmatpush1.bf16.msra.mxu0 %v1495_v18  ;;  %1359 = vmatpush3.bf16.msra.mxu1 %v1509_v19 }
 0x316   :  { %806 = vmatprep.subr.bf16.mxu0 %v1500_v20  ;;  %1360 = vmatprep.subr.bf16.mxu1 %v1767_v0  ;;  %v1520_v20 = vld [vmem:[#allocation13] sm:$0xff]  }
 0x319   :  { %807 = vmatpush1.bf16.msra.mxu0 %v1498_v21  ;;  %1361 = vmatpush3.bf16.msra.mxu1 %v1510_v22  ;;  %v1521_v21 = vld [vmem:[#allocation13 + $0x8] sm:$0xff]   ;;  %v1522_v22 = vld [vmem:[#allocation13 + $0x10] sm:$0xff]  }
 0x31a   :  { %808 = vmatprep.subr.bf16.mxu0 %v1504_v23  ;;  %1362 = vmatprep.subr.bf16.mxu1 %v1767_v0 }
 0x31d   :  { %809 = vmatpush1.bf16.msra.mxu0 %v1502_v24  ;;  %1363 = vmatpush3.bf16.msra.mxu1 %v1511_v26 }
 0x31e   :  { %1368 = vmatprep.subr.bf16.mxu0 %v1767_v0  ;;  %1388 = vmatprep.subr.bf16.mxu1 %v1767_v0 }
 0x320   :  { %827 = vmatmul.mubr.bf16.vlgmr.msra.gmra.mrb[4].mxu0 %v616_v27  ;;  %1365 = vmatmul.mubr.bf16.vlgmr.msra.gmra.mrb[8].mxu1 %v616_v27 }
 0x321   :  { %1384 = vmatprep.mubr.msk.bf16.mxu0 %vm1768_vm0, %v1767_v0  ;;  %1404 = vmatprep.mubr.msk.bf16.mxu1 %vm1768_vm0, %v1767_v0 }
 0x322   :  { %1369 = vmatpush3.bf16.msra.mxu0 %v1512_v28  ;;  %1389 = vmatpush3.bf16.msra.mxu1 %v1520_v20 }
 0x323   :  { %1370 = vmatprep.subr.bf16.mxu0 %v1767_v0  ;;  %1390 = vmatprep.subr.bf16.mxu1 %v1767_v0 }
 0x326   :  { %1371 = vmatpush3.bf16.msra.mxu0 %v1513_v29  ;;  %1391 = vmatpush3.bf16.msra.mxu1 %v1521_v21 }
 0x327   :  { %1372 = vmatprep.subr.bf16.mxu0 %v1767_v0  ;;  %1392 = vmatprep.subr.bf16.mxu1 %v1767_v0 }
 0x32a   :  { %1373 = vmatpush3.bf16.msra.mxu0 %v1514_v30  ;;  %1393 = vmatpush3.bf16.msra.mxu1 %v1522_v22 }
 0x32b   :  { %1374 = vmatprep.subr.bf16.mxu0 %v1767_v0  ;;  %1394 = vmatprep.subr.bf16.mxu1 %v1767_v0 }
 0x32e   :  { %1375 = vmatpush3.bf16.msra.mxu0 %v1515_v31 }
 0x32f   :  { %1376 = vmatprep.subr.bf16.mxu0 %v1767_v0 }
 0x332   :  { %1377 = vmatpush3.bf16.msra.mxu0 %v1516_v32 }
 0x333   :  { %1378 = vmatprep.subr.bf16.mxu0 %v1767_v0 }
 0x336   :  { %1379 = vmatpush3.bf16.msra.mxu0 %v1517_v33  ;;  %v1523_v33 = vld [vmem:[#allocation13 + $0x18] sm:$0xff]  }
 0x337   :  { %1380 = vmatprep.subr.bf16.mxu0 %v1767_v0  ;;  %1395 = vmatpush3.bf16.msra.mxu1 %v1523_v33 }
 0x338   :  { %1396 = vmatprep.subr.bf16.mxu1 %v1767_v0 }
 0x33a   :  { %1381 = vmatpush3.bf16.msra.mxu0 %v1518_v34  ;;  %v1524_v34 = vld [vmem:[#allocation13 + $0x20] sm:$0xff]  }
 0x33b   :  { %1382 = vmatprep.subr.bf16.mxu0 %v1767_v0  ;;  %1397 = vmatpush3.bf16.msra.mxu1 %v1524_v34 }
 0x33c   :  { %1398 = vmatprep.subr.bf16.mxu1 %v1767_v0 }
 0x33e   :  { %1383 = vmatpush3.bf16.msra.mxu0 %v1519_v35  ;;  %v1525_v35 = vld [vmem:[#allocation13 + $0x28] sm:$0xff]  }
 0x33f   :  { %1399 = vmatpush3.bf16.msra.mxu1 %v1525_v35 }
 0x340   :  { %1400 = vmatprep.subr.bf16.mxu1 %v1767_v0 }
 0x3d3   :  { %v610_v36 = vpop.f32.mrb[4].mxu1 }
 0x3d4   :  { %v1346_v37 = vpop.f32.mrb[5].mxu1  ;;  %v611_v10 = vadd.f32 %v610_v36, %v403_v6  ;;  %v1526_v36 = vld [vmem:[#allocation13 + $0x30] sm:$0xff]  }
 0x3d5   :  { %v613_v38 = vpop.f32.mrb[6].mxu1  ;;  %1401 = vmatpush3.bf16.msra.mxu1 %v1526_v36  ;;  %v1527_v37 = vld [vmem:[#allocation13 + $0x38] sm:$0xff]  }
 0x3d6   :  { %v1347_v39 = vpop.f32.mrb[7].mxu1  ;;  %1402 = vmatprep.subr.bf16.mxu1 %v1767_v0 }
 0x3d9   :  { %1403 = vmatpush3.bf16.msra.mxu1 %v1527_v37 }
 0x3f3   :  { %v828_v51 = vpop.f32.mrb[4].mxu0  ;;  %v869_v53 = vpop.f32.mrb[8].mxu1 }
 0x3f4   :  { %v1409_v54 = vadd.f32 %v1408_v50, %v828_v51  ;;  %v830_v55 = vpop.f32.mrb[5].mxu0  ;;  %v1366_v56 = vpop.f32.mrb[9].mxu1  ;;  %v870_v8 = vadd.f32 %v869_v53, %v662_v4 }
 0x3f5   :  { %v832_v57 = vpop.f32.mrb[6].mxu0  ;;  %v872_v58 = vpop.f32.mrb[10].mxu1  ;;  %v1411_v62 = vadd.f32 %v1410_v52, %v830_v55 }
 0x3f6   :  { %v1216_v59 = vmul.f32 -1.442695, %v1409_v54  ;;  %v833_v60 = vpop.f32.mrb[7].mxu0  ;;  %v1367_v61 = vpop.f32.mrb[11].mxu1 }
 0x3f7   :  { %v1217_v63 = vmul.f32 -1.442695, %v1411_v62 }
 0x3f8   :  { %1532 = vpow2.f32 %v1216_v59 }
 0x3f9   :  { %1534 = vpow2.f32 %v1217_v63 }
 0x402   :  { %v1533_v1 = vpop.eup %1532 }
 0x403   :  { %v879_v2 = vadd.f32 1.0, %v1533_v1  ;;  %v1535_v5 = vpop.eup %1534 }
 0x404   :  { %v886_v7 = vadd.f32 1.0, %v1535_v5 }
 0x405   :  { %1536 = vrcp.f32 %v879_v2 }
 0x406   :  { %1538 = vrcp.f32 %v886_v7 }
 0x40f   :  { %v1537_v9 = vpop.eup %1536 }
 0x410   :  { %v889_v11 = vmul.f32 %v1537_v9, %v870_v8  ;;  %v1539_v13 = vpop.eup %1538 }
 0x411   :  { %v892_v14 = vsub.f32 1.0, %v1539_v13  ;;  %v894_v17 = vmul.f32 %v1539_v13, %v1983_v25 }
 0x412   :  { %v890_v12 = vadd.f32 %v889_v11, %v611_v10 }
 0x414   :  { %1540 = vtanh.f32 %v890_v12 }
 0x41e   :  { %v1541_v15 = vpop.eup %1540 }
 0x41f   :  { %v893_v16 = vmul.f32 %v1541_v15, %v892_v14 }
 0x421   :  { %v895_v18 = vadd.f32 %v894_v17, %v893_v16 }
 0x423   :  { %v896_v19 = vpack.c.bf16 %v895_v18, %v895_v18  ;;  %1119 = vst [vmem:[#allocation15] sm:$0xff] %v895_v18 }
 0x425   :  { %1385 = vmatmul.mubr.bf16.vlgmr.msra.gmra.mrb[8].mxu0 %v896_v19 }
 0x4f8   :  { %v995_v23 = vpop.f32.mrb[8].mxu0 }
 0x4f9   :  { %v1002_v24 = vmul.f32 0.70710677, %v995_v23  ;;  %v1386_v26 = vpop.f32.mrb[9].mxu0  ;;  %v1001_v29 = vmul.f32 0.5, %v995_v23 }
 0x4fa   :  { %v998_v25 = vpop.f32.mrb[10].mxu0 }
 0x4fb   :  { %1542 = verf.f32 %v1002_v24  ;;  %v1387_v27 = vpop.f32.mrb[11].mxu0 }
 0x505   :  { %v1543_v28 = vpop.eup %1542 }
 0x506   :  { %v1004_v30 = vadd.f32 1.0, %v1543_v28 }
 0x508   :  { %v1005_v31 = vmul.f32 %v1004_v30, %v1001_v29 }
 0x50a   :  { %v1006_v32 = vmul.f32 %v1005_v31, %v1005_v31 }
 0x50c   :  { %1007 = vadd.xlane.f32.xlu0 %v1006_v32 }
 0x599   :  { %v1008_v38 = vpop.xlane.xlu0 %1007 }
 0x59a   :  { %v1009_v39 = vadd.f32 1e-12, %v1008_v38 }
 0x59c   :  { %1544 = vrsqrt.f32 %v1009_v39 }
 0x5a6   :  { %v1545_v40 = vpop.eup %1544 }
 0x5a7   :  { %v1011_v41 = vmul.f32 %v1545_v40, %v1005_v31 }
 0x5a9   :  { %v1012_v42 = vmul.f32 4.0, %v1011_v41 }
 0x5ab   :  { %v1013_v43 = vpack.c.bf16 %v1012_v42, %v1012_v42 }
 0x5ad   :  { %1405 = vmatmul.mubr.bf16.vlgmr.msra.gmra.mrb[12].mxu1 %v1013_v43 }
 0x5ae   :  { %1711 = shalt.err (!%p1708_p4)
}
 0x5af   :  { %s1712_s26 = scalar_lea.hbm %s2050_s11, 128 }
 0x5b0   :  { %p1713_p5 = scmp.ne.s32.totalorder %s2050_s11, %s1712_s26  ;;  %p1716_p6 = scmp.lt.u32.totalorder %s1712_s26, %s2050_s11 }
 0x5b2   :  { %p1718_p7 = pnand %p1716_p6, %p1713_p5 }
 0x5b4   :  { %1721 = shalt.err (!%p1718_p7)
}
 0x5b5   :  { %1139 = dma.vmem_to_hbm [thread:$0]  %s1137_s7, 128, %s2050_s11, [#allocation16]  }
 0x5b6   :  { %s1771_s21 = smov [#allocation14]  }
 0x5b7   :  { %s1126_s22 = sshll.u32 %s1771_s21, 4  ;;  %s1127_s22 = int_to_ptr.vmem [resolvable:$true] %s1126_s22 }
 0x5b8   :  { %s1722_s23 = scalar_lea.vmem %s1127_s22, 128  ;;  %p1727_p9 = scmp.lt.s32.totalorder %s1127_s22, %s1127_s22 }
 0x5b9   :  { %p1723_p8 = scmp.ne.s32.totalorder %s1127_s22, %s1722_s23  ;;  %p1728_p10 = scmp.lt.s32.totalorder %s1722_s23, %s1722_s23 }
 0x5bb   :  { %p1729_p11 = por %p1728_p10, %p1727_p9 }
 0x5bd   :  { %p1730_p12 = pnand %p1729_p11, %p1723_p8 }
 0x680   :  { %v1112_v0 = vpop.f32.mrb[12].mxu1 }
 0x681   :  { %1118 = vst [vmem:[#allocation14] sm:$0xff] %v1112_v0  ;;  %v1406_v44 = vpop.f32.mrb[13].mxu1 }
 0x682   :  { %v1115_v45 = vpop.f32.mrb[14].mxu1 }
 0x683   :  { %1733 = shalt.err (!%p1730_p12)
}
 0x684   :  { %s1734_s1 = scalar_lea.hbm %s2049_s10, 128 }
 0x685   :  { %p1735_p13 = scmp.ne.s32.totalorder %s2049_s10, %s1734_s1  ;;  %p1738_p0 = scmp.lt.u32.totalorder %s1734_s1, %s2049_s10 }
 0x687   :  { %p1740_p1 = pnand %p1738_p0, %p1735_p13 }
 0x689   :  { %1743 = shalt.err (!%p1740_p1)
}
 0x68a   :  { %1129 = dma.vmem_to_hbm [thread:$0]  %s1127_s22, 128, %s2049_s10, [#allocation4]   ;;  %v1407_v46 = vpop.f32.mrb[15].mxu1 }
 0x68b   :  { %1752 = dma.done.wait [#allocation4], 128  }
 0x68c   :  { %1753 = vsyncadd [#allocation4], 4294967168 }
 0x68d   :  { %1754 = dma.done.wait [#allocation16], 128  }
 0x68e   :  { %1755 = vsyncadd [#allocation16], 4294967168 }
 0x68f   :  { %1146 = vsyncpa [#allocation3], 1 }
 0x690   :  { %1147 = vsyncpa [#allocation6], 1 }
 0x691   :  { %1148 = vsyncpa [#allocation9], 1 }
 0x692   :  { %1149 = vsyncpa [#allocation12], 1 }
 0x693   :  { %1150 = vsyncpa [#allocation4], 1 }
 0x694   :  { %1151 = vsyncpa [#allocation16], 1 }

</bundles_post_ra>
